<compile_context>
chip_gen: v6e
topology: v6e:2x2x1
jax: 0.10.0
libtpu: 0.0.40
codegen_flags: <defaults>
</compile_context>

<pallas_src>
import jax
import jax.numpy as jnp
import numpy as np
from jax.experimental import pallas as pl
from jax.experimental.pallas import tpu as pltpu


def _vmem_plan():
    """(per-block budget bytes, vmem_limit_bytes) with safe fallbacks."""
    cap = None
    try:
        info = pltpu.get_tpu_info()
        cap = int(getattr(info, "vmem_capacity_bytes", 0)) or None
    except Exception:
        cap = None
    if cap is None:
        cap = 64 << 20                      # conservative: v7x per-core VMEM
    limit = max(32 << 20, min(cap // 2, 64 << 20))
    budget = min(limit // 5, 16 << 20)      # dbl-buffered in/out + f32 temporaries
    return budget, limit


def _num_tensorcores():
    """Best-effort TensorCore count per chip (v7x == 2, v5e/v6e == 1)."""
    try:
        kind = (jax.devices()[0].device_kind or "").lower()
        if "v7" in kind:
            return 2
    except Exception:
        pass
    return 1


def _pick_bt(B, N, per_image_bytes, budget, ncores):
    """Images per grid step: largest divisor of B that fits the VMEM budget,
    keeps lane blocks 128-aligned, and (on 2-TC chips) keeps an even grid>=2."""
    def lane_ok(bt):
        return bt == B or (bt * N) % 128 == 0
    divisors = [d for d in range(1, B + 1) if B % d == 0 and lane_ok(d)]
    fitting = [d for d in divisors if d * per_image_bytes <= budget] or [min(divisors)]
    if ncores >= 2 and B >= 2:
        cands = [d for d in fitting if B // d >= 2] or fitting
        even = [d for d in cands if (B // d) % 2 == 0]
        return max(even or cands)
    return max(fitting)


def _make_kernel(C_in, W, N, Lt, C2, C4):
    def kernel(x_ref, w_ref, b_ref, o_ref):
        # All in-kernel math in f32 (I/O may be bf16); no-op cast for f32 I/O.
        xb = x_ref[...].astype(jnp.float32)                      # (C_in, Lt)

        # Edge masks from a single (1, Lt) lane iota + tiny (C_in, 1) channel iota.
        col = jax.lax.broadcasted_iota(jnp.int32, (1, Lt), 1)
        q = col % N                          # position within an image
        wpos = col % W                       # w within a row
        ch = jax.lax.broadcasted_iota(jnp.int32, (C_in, 1), 0)
        zero = jnp.float32(0.0)

        # --- time shift along W: lane rolls + edge masks (masks also cancel
        #     roll wrap-around across packed images / block boundaries) ---
        x_p1 = pltpu.roll(xb, 1, axis=1)                 # value at w-1
        x_m1 = pltpu.roll(xb, Lt - 1, axis=1)            # value at w+1
        x_fwd = jnp.where(wpos == 0, zero, x_p1)         # forward shift, pad w=0
        x_bwd = jnp.where(wpos == W - 1, zero, x_m1)     # backward shift, pad w=W-1
        x_sh = jnp.where(ch < C4, x_fwd, jnp.where(ch < C2, x_bwd, xb))

        # --- (3,1) 'same' conv over H: rolls by +/-W with row masks,
        #     three accumulating 2-D MXU dots (no sublane concat) ---
        tap0 = jnp.where(q < W, zero, pltpu.roll(x_sh, W, axis=1))            # h-1
        tap2 = jnp.where(q >= N - W, zero, pltpu.roll(x_sh, Lt - W, axis=1))  # h+1

        acc = jnp.dot(w_ref[0], tap0, preferred_element_type=jnp.float32)
        acc = acc + jnp.dot(w_ref[1], x_sh, preferred_element_type=jnp.float32)
        acc = acc + jnp.dot(w_ref[2], tap2, preferred_element_type=jnp.float32)

        o_ref[...] = (acc + b_ref[...]).astype(o_ref.dtype)
    return kernel


def tsconv(x, weight, bias, *, io_dtype=None):
    """x: (B, C_in, H, W); weight: (C_out, C_in, 3, 1); bias: (C_out,).

    io_dtype: optional dtype (e.g. jnp.bfloat16) for the HBM-resident kernel
    input/output (halves DMA bytes on this memory-bound kernel).  In-kernel
    math and accumulation stay float32.  Returned array has dtype io_dtype
    (or x.dtype when io_dtype is None).
    """
    B, C_in, H, W = x.shape
    C_out = weight.shape[0]
    N = H * W
    L = B * N
    C2 = C_in // 2          # dynamic channels
    C4 = C2 // 2            # forward-shifted channels

    io_dt = io_dtype if io_dtype is not None else x.dtype
    io_bytes = np.dtype(io_dt).itemsize

    # Per-H-tap weights: (3, C_out, C_in), kept f32 (tiny).
    w_taps = jnp.transpose(weight[..., 0], (2, 0, 1)).astype(jnp.float32)
    b2d = bias.reshape(C_out, 1).astype(jnp.float32)

    # Fold batch into the lane axis: (C_in, B*H*W), whole images contiguous.
    x2d = jnp.transpose(x, (1, 0, 2, 3)).reshape(C_in, L).astype(io_dt)

    budget, vmem_limit = _vmem_plan()
    ncores = _num_tensorcores()
    # Per-image VMEM footprint: double-buffered in/out blocks + f32 temporaries
    # (rolled copies, shifted/selected tensors, taps, accumulator).
    per_image = N * (C_in * (2 * io_bytes + 8 * 4) + C_out * (2 * io_bytes + 4))
    Bt = _pick_bt(B, N, per_image, budget, ncores)
    Lt = Bt * N
    # TODO(synk): if a single image exceeds the VMEM budget (very large H*W),
    # add H-tiling with a +/-W lane halo instead of whole-image lane blocks.

    kernel = _make_kernel(C_in, W, N, Lt, C2, C4)

    out2d = pl.pallas_call(
        kernel,
        out_shape=jax.ShapeDtypeStruct((C_out, L), io_dt),
        grid_spec=pltpu.PrefetchScalarGridSpec(
            num_scalar_prefetch=0,
            grid=(L // Lt,),
            in_specs=[
                pl.BlockSpec((C_in, Lt), lambda i: (0, i)),
                pl.BlockSpec((3, C_out, C_in), lambda i: (0, 0, 0)),
                pl.BlockSpec((C_out, 1), lambda i: (0, 0)),
            ],
            out_specs=pl.BlockSpec((C_out, Lt), lambda i: (0, i)),
        ),
        compiler_params=pltpu.CompilerParams(
            dimension_semantics=("parallel",),
            vmem_limit_bytes=vmem_limit),
    )(x2d, w_taps, b2d)

    return jnp.transpose(out2d.reshape(C_out, B, H, W), (1, 0, 2, 3))


def tsconv_reference(x, weight, bias):
    """Pure-JAX reference matching the PyTorch forward."""
    B, C, H, W = x.shape
    C2 = C // 2
    C4 = C2 // 2
    zeros_w = jnp.zeros((B, C4, H, 1), x.dtype)
    x_fwd = jnp.concatenate([zeros_w, x[:, :C4, :, :-1]], axis=-1)
    x_bwd = jnp.concatenate([x[:, C4:C2, :, 1:], zeros_w], axis=-1)
    x_sh = jnp.concatenate([x_fwd, x_bwd, x[:, C2:, :, :]], axis=1)
    x_pad = jnp.pad(x_sh, ((0, 0), (0, 0), (1, 1), (0, 0)))
    C_out = weight.shape[0]
    out = jnp.zeros((B, C_out, H, W), jnp.float32)
    for kh in range(3):
        out = out + jnp.einsum("oi,bihw->bohw", weight[:, :, kh, 0],
                               x_pad[:, :, kh:kh + H, :])
    return out + bias.reshape(1, C_out, 1, 1)


if __name__ == "__main__":
    B, C_in, H, W = 2, 4, 16, 16
    C_out = 8

    key = jax.random.PRNGKey(0)
    kx, kw, kb = jax.random.split(key, 3)
    x = jax.random.normal(kx, (B, C_in, H, W), dtype=jnp.float32)
    # torch shapes: weight (C_out, C_in, 3, 1), bias (C_out,)
    weight = jax.random.normal(kw, (C_out, C_in, 3, 1), dtype=jnp.float32) * 0.1
    bias = jax.random.normal(kb, (C_out,), dtype=jnp.float32) * 0.1

    ref = tsconv_reference(x, weight, bias)

    # Exact path (f32 HBM I/O) — tight tolerance.
    out = tsconv(x, weight, bias)
    jax.block_until_ready(out)
    np.testing.assert_allclose(np.asarray(out), np.asarray(ref),
                               rtol=1e-5, atol=1e-5)

    # Bandwidth-optimized path (bf16 HBM I/O, f32 in-kernel math) — loose tol.
    out_bf16 = tsconv(x, weight, bias, io_dtype=jnp.bfloat16)
    jax.block_until_ready(out_bf16)
    np.testing.assert_allclose(np.asarray(out_bf16).astype(np.float32),
                               np.asarray(ref), rtol=3e-2, atol=3e-2)

    print("KERNEL_OK")
</pallas_src>

<mosaic_0001>
module attributes {stable_mosaic.version = 11 : i64} {
  func.func @kernel(%arg0: i32, %arg1: memref<4x512xf32, #tpu.memory_space<vmem>>, %arg2: memref<3x8x4xf32, #tpu.memory_space<vmem>>, %arg3: memref<8x1xf32, #tpu.memory_space<vmem>>, %arg4: memref<8x512xf32, #tpu.memory_space<vmem>>) attributes {dimension_semantics = [#tpu.dimension_semantics<parallel>], iteration_bounds = array<i64: 1>, scalar_prefetch = 0 : i64, scratch_operands = 0 : i64, tpu.core_type = #tpu.core_type<tc>, window_params = [{transform_indices = @transform_0, window_bounds = array<i64: 4, 512>}, {pipeline_mode = #tpu.pipeline_mode<synchronous>, transform_indices = @transform_1, window_bounds = array<i64: 3, 8, 4>}, {pipeline_mode = #tpu.pipeline_mode<synchronous>, transform_indices = @transform_2, window_bounds = array<i64: 8, 1>}, {transform_indices = @transform_3, window_bounds = array<i64: 8, 512>}]} {
    %c0 = arith.constant 0 : index
    %c0_0 = arith.constant 0 : index
    %0 = vector.load %arg1[%c0, %c0_0] : memref<4x512xf32, #tpu.memory_space<vmem>>, vector<4x512xf32>
    %1 = tpu.iota {dimensions = array<i32: 1>} : vector<1x512xi32>
    %c256_i32 = arith.constant 256 : i32
    %c0_i32 = arith.constant 0 : i32
    %2 = arith.cmpi eq, %c256_i32, %c0_i32 : i32
    %c1_i32 = arith.constant 1 : i32
    %3 = arith.select %2, %c1_i32, %c256_i32 : i32
    %4 = vector.broadcast %3 : i32 to vector<1x512xi32>
    %5 = arith.remsi %1, %4 : vector<1x512xi32>
    %c0_i32_1 = arith.constant 0 : i32
    %6 = vector.broadcast %c0_i32_1 : i32 to vector<1x512xi32>
    %7 = arith.cmpi ne, %5, %6 : vector<1x512xi32>
    %c0_i32_2 = arith.constant 0 : i32
    %8 = vector.broadcast %c0_i32_2 : i32 to vector<1x512xi32>
    %9 = arith.cmpi slt, %5, %8 : vector<1x512xi32>
    %c0_i32_3 = arith.constant 0 : i32
    %10 = arith.cmpi slt, %3, %c0_i32_3 : i32
    %11 = vector.broadcast %10 : i1 to vector<1x512xi1>
    %12 = vector.broadcast %11 : vector<1x512xi1> to vector<1x512xi1>
    %13 = arith.xori %9, %12 : vector<1x512xi1>
    %14 = arith.andi %13, %7 : vector<1x512xi1>
    %15 = vector.broadcast %3 : i32 to vector<1x512xi32>
    %16 = arith.addi %5, %15 : vector<1x512xi32>
    %17 = arith.select %14, %16, %5 : vector<1x512xi1>, vector<1x512xi32>
    %c16_i32 = arith.constant 16 : i32
    %c0_i32_4 = arith.constant 0 : i32
    %18 = arith.cmpi eq, %c16_i32, %c0_i32_4 : i32
    %c1_i32_5 = arith.constant 1 : i32
    %19 = arith.select %18, %c1_i32_5, %c16_i32 : i32
    %20 = vector.broadcast %19 : i32 to vector<1x512xi32>
    %21 = arith.remsi %1, %20 : vector<1x512xi32>
    %c0_i32_6 = arith.constant 0 : i32
    %22 = vector.broadcast %c0_i32_6 : i32 to vector<1x512xi32>
    %23 = arith.cmpi ne, %21, %22 : vector<1x512xi32>
    %c0_i32_7 = arith.constant 0 : i32
    %24 = vector.broadcast %c0_i32_7 : i32 to vector<1x512xi32>
    %25 = arith.cmpi slt, %21, %24 : vector<1x512xi32>
    %c0_i32_8 = arith.constant 0 : i32
    %26 = arith.cmpi slt, %19, %c0_i32_8 : i32
    %27 = vector.broadcast %26 : i1 to vector<1x512xi1>
    %28 = vector.broadcast %27 : vector<1x512xi1> to vector<1x512xi1>
    %29 = arith.xori %25, %28 : vector<1x512xi1>
    %30 = arith.andi %29, %23 : vector<1x512xi1>
    %31 = vector.broadcast %19 : i32 to vector<1x512xi32>
    %32 = arith.addi %21, %31 : vector<1x512xi32>
    %33 = arith.select %30, %32, %21 : vector<1x512xi1>, vector<1x512xi32>
    %34 = tpu.iota {dimensions = array<i32: 0>} : vector<4x1xi32>
    %c1_i32_9 = arith.constant 1 : i32
    %35 = tpu.dynamic_rotate %0 by %c1_i32_9 dim 1 : vector<4x512xf32>, i32 -> vector<4x512xf32>
    %c511_i32 = arith.constant 511 : i32
    %36 = tpu.dynamic_rotate %0 by %c511_i32 dim 1 : vector<4x512xf32>, i32 -> vector<4x512xf32>
    %c0_i32_10 = arith.constant 0 : i32
    %37 = vector.broadcast %c0_i32_10 : i32 to vector<1x512xi32>
    %38 = arith.cmpi eq, %33, %37 : vector<1x512xi32>
    %cst = arith.constant 0.000000e+00 : f32
    %39 = vector.shape_cast %38 : vector<1x512xi1> to vector<1x512xi1>
    %40 = vector.broadcast %39 : vector<1x512xi1> to vector<4x512xi1>
    %41 = vector.broadcast %cst : f32 to vector<4x512xf32>
    %42 = arith.select %40, %41, %35 : vector<4x512xi1>, vector<4x512xf32>
    %c15_i32 = arith.constant 15 : i32
    %43 = vector.broadcast %c15_i32 : i32 to vector<1x512xi32>
    %44 = arith.cmpi eq, %33, %43 : vector<1x512xi32>
    %cst_11 = arith.constant 0.000000e+00 : f32
    %45 = vector.shape_cast %44 : vector<1x512xi1> to vector<1x512xi1>
    %46 = vector.broadcast %45 : vector<1x512xi1> to vector<4x512xi1>
    %47 = vector.broadcast %cst_11 : f32 to vector<4x512xf32>
    %48 = arith.select %46, %47, %36 : vector<4x512xi1>, vector<4x512xf32>
    %c1_i32_12 = arith.constant 1 : i32
    %49 = vector.broadcast %c1_i32_12 : i32 to vector<4x1xi32>
    %50 = arith.cmpi slt, %34, %49 : vector<4x1xi32>
    %c2_i32 = arith.constant 2 : i32
    %51 = vector.broadcast %c2_i32 : i32 to vector<4x1xi32>
    %52 = arith.cmpi slt, %34, %51 : vector<4x1xi32>
    %53 = vector.shape_cast %52 : vector<4x1xi1> to vector<4x1xi1>
    %54 = vector.broadcast %53 : vector<4x1xi1> to vector<4x512xi1>
    %55 = arith.select %54, %48, %0 : vector<4x512xi1>, vector<4x512xf32>
    %56 = vector.shape_cast %50 : vector<4x1xi1> to vector<4x1xi1>
    %57 = vector.broadcast %56 : vector<4x1xi1> to vector<4x512xi1>
    %58 = arith.select %57, %42, %55 : vector<4x512xi1>, vector<4x512xf32>
    %c16_i32_13 = arith.constant 16 : i32
    %59 = vector.broadcast %c16_i32_13 : i32 to vector<1x512xi32>
    %60 = arith.cmpi slt, %17, %59 : vector<1x512xi32>
    %c16_i32_14 = arith.constant 16 : i32
    %61 = tpu.dynamic_rotate %58 by %c16_i32_14 dim 1 : vector<4x512xf32>, i32 -> vector<4x512xf32>
    %cst_15 = arith.constant 0.000000e+00 : f32
    %62 = vector.shape_cast %60 : vector<1x512xi1> to vector<1x512xi1>
    %63 = vector.broadcast %62 : vector<1x512xi1> to vector<4x512xi1>
    %64 = vector.broadcast %cst_15 : f32 to vector<4x512xf32>
    %65 = arith.select %63, %64, %61 : vector<4x512xi1>, vector<4x512xf32>
    %c240_i32 = arith.constant 240 : i32
    %66 = vector.broadcast %c240_i32 : i32 to vector<1x512xi32>
    %67 = arith.cmpi sge, %17, %66 : vector<1x512xi32>
    %c496_i32 = arith.constant 496 : i32
    %68 = tpu.dynamic_rotate %58 by %c496_i32 dim 1 : vector<4x512xf32>, i32 -> vector<4x512xf32>
    %cst_16 = arith.constant 0.000000e+00 : f32
    %69 = vector.shape_cast %67 : vector<1x512xi1> to vector<1x512xi1>
    %70 = vector.broadcast %69 : vector<1x512xi1> to vector<4x512xi1>
    %71 = vector.broadcast %cst_16 : f32 to vector<4x512xf32>
    %72 = arith.select %70, %71, %68 : vector<4x512xi1>, vector<4x512xf32>
    %c0_17 = arith.constant 0 : index
    %c0_18 = arith.constant 0 : index
    %c0_19 = arith.constant 0 : index
    %73 = vector.load %arg2[%c0_17, %c0_18, %c0_19] : memref<3x8x4xf32, #tpu.memory_space<vmem>>, vector<1x8x4xf32>
    %74 = vector.shape_cast %73 : vector<1x8x4xf32> to vector<8x4xf32>
    %cst_20 = arith.constant dense<0.000000e+00> : vector<8x512xf32>
    %75 = tpu.matmul %74, %65, %cst_20 {dimension_numbers = #tpu.dot_dimension_numbers<[1], [0], [0], [1], [0, 0, 1, 1], [], []>} : vector<8x4xf32>, vector<4x512xf32>, vector<8x512xf32> -> vector<8x512xf32>
    %c1 = arith.constant 1 : index
    %c0_21 = arith.constant 0 : index
    %c0_22 = arith.constant 0 : index
    %76 = vector.load %arg2[%c1, %c0_21, %c0_22] : memref<3x8x4xf32, #tpu.memory_space<vmem>>, vector<1x8x4xf32>
    %77 = vector.shape_cast %76 : vector<1x8x4xf32> to vector<8x4xf32>
    %cst_23 = arith.constant dense<0.000000e+00> : vector<8x512xf32>
    %78 = tpu.matmul %77, %58, %cst_23 {dimension_numbers = #tpu.dot_dimension_numbers<[1], [0], [0], [1], [0, 0, 1, 1], [], []>} : vector<8x4xf32>, vector<4x512xf32>, vector<8x512xf32> -> vector<8x512xf32>
    %79 = arith.addf %75, %78 : vector<8x512xf32>
    %c2 = arith.constant 2 : index
    %c0_24 = arith.constant 0 : index
    %c0_25 = arith.constant 0 : index
    %80 = vector.load %arg2[%c2, %c0_24, %c0_25] : memref<3x8x4xf32, #tpu.memory_space<vmem>>, vector<1x8x4xf32>
    %81 = vector.shape_cast %80 : vector<1x8x4xf32> to vector<8x4xf32>
    %cst_26 = arith.constant dense<0.000000e+00> : vector<8x512xf32>
    %82 = tpu.matmul %81, %72, %cst_26 {dimension_numbers = #tpu.dot_dimension_numbers<[1], [0], [0], [1], [0, 0, 1, 1], [], []>} : vector<8x4xf32>, vector<4x512xf32>, vector<8x512xf32> -> vector<8x512xf32>
    %83 = arith.addf %79, %82 : vector<8x512xf32>
    %c0_27 = arith.constant 0 : index
    %c0_28 = arith.constant 0 : index
    %84 = vector.load %arg3[%c0_27, %c0_28] : memref<8x1xf32, #tpu.memory_space<vmem>>, vector<8x1xf32>
    %85 = vector.broadcast %84 : vector<8x1xf32> to vector<8x512xf32>
    %86 = arith.addf %83, %85 : vector<8x512xf32>
    %c0_29 = arith.constant 0 : index
    %c0_30 = arith.constant 0 : index
    %87 = vector.load %arg4[%c0_29, %c0_30] : memref<8x512xf32, #tpu.memory_space<vmem>>, vector<8x512xf32>
    tpu.vector_store %arg4[%c0_29, %c0_30], %86 {strides = array<i32>} : memref<8x512xf32, #tpu.memory_space<vmem>>, vector<8x512xf32>,
    return
  }
  func.func @transform_0(%arg0: i32) -> (i32, i32) {
    %c0_i32 = arith.constant 0 : i32
    %c0_i32_0 = arith.constant 0 : i32
    return %c0_i32, %arg0 : i32, i32
  }
  func.func @transform_1(%arg0: i32) -> (i32, i32, i32) {
    %c0_i32 = arith.constant 0 : i32
    %c0_i32_0 = arith.constant 0 : i32
    %c0_i32_1 = arith.constant 0 : i32
    %c0_i32_2 = arith.constant 0 : i32
    return %c0_i32, %c0_i32_0, %c0_i32_1 : i32, i32, i32
  }
  func.func @transform_2(%arg0: i32) -> (i32, i32) {
    %c0_i32 = arith.constant 0 : i32
    %c0_i32_0 = arith.constant 0 : i32
    %c0_i32_1 = arith.constant 0 : i32
    return %c0_i32, %c0_i32_0 : i32, i32
  }
  func.func @transform_3(%arg0: i32) -> (i32, i32) {
    %c0_i32 = arith.constant 0 : i32
    %c0_i32_0 = arith.constant 0 : i32
    return %c0_i32, %arg0 : i32, i32
  }
}

</mosaic_0001>

<bundles_post_ra>
// kernel: tpu_custom_call.1
= control target key start
LH: loop header
LB: loop body
LE: loop exit
PB: predicated region body
PF: predicated region fallthrough
CT: control target
= control target key end

     0   :  { %s818_s16 = smov 127   ;;  %s1014_s0 = inlined_call_operand.vmem [shape: f32[4,512], index: 0, kind: input, shape index: {}]   ;;  %s1015_s1 = inlined_call_operand.vmem [shape: f32[3,8,4], index: 1, kind: input, shape index: {}]   ;;  %s1016_s2 = inlined_call_operand.vmem [shape: f32[8,1], index: 2, kind: input, shape index: {}]   ;;  %s1017_s3 = inlined_call_operand.hbm [shape: f32[8,512], index: 3, kind: output, shape index: {}]  }
   0x1   :  { %v848_v0 = vld [vmem:[%s1014_s0 + $0x8] sm:$0xff]  ;;  %v853_v1 = vld [vmem:[%s1014_s0] sm:$0xff] }
   0x2   :  { %143 = vrot.lane.b32.xlu1 %v848_v0, %s818_s16  ;;  %139 = vrot.lane.b32.xlu0 %v853_v1, %s818_s16  ;;  %v859_v2 = vcombine.high %v848_v0, %v848_v0  ;;  %v122_v3 = vcombine.high %v853_v1, %v853_v1 }
   0x3   :  { %8 = vsyncpa [#allocation3], 0  ;;  %s819_s17 = smov 1   ;;  %v17_v4 = vlaneseq  ;;  %v820_v20 = vmov 0.0   ;;  %vm263_vm9 = vcmask 1043456   ;;  %s821_s0 = smov 16  }
   0x4   :  { %340 = vmatprep.mubr.f32.mxu0 %v820_v20  ;;  %411 = vmatprep.mubr.f32.mxu1 %v820_v20  ;;  %v766_v54 = vld [vmem:[%s1015_s1 + $0x8] sm:$0xff]  ;;  %vm259_vm13 = vcmask 31744   ;;  %s822_s20 = smov 112   ;;  %v823_v55 = vmov 0   ;;  %v738_v56 = vld [vmem:[%s1016_s2] sm:$0xff] }
   0x5   :  { %v867_v5 = vand.u32 127, %v17_v4  ;;  %v119_v13 = vshrl.u32 %v17_v4, 7  ;;  %793 = vset.pattern.permute.xlu0 %v823_v55 }
   0x6   :  { %145 = vrot.lane.b32.xlu1 %v859_v2, %s818_s16  ;;  %141 = vrot.lane.b32.xlu0 %v122_v3, %s818_s16 }
   0x7   :  { %v870_v6 = vadd.s32 128, %v867_v5  ;;  %v873_v7 = vadd.s32 384, %v867_v5  ;;  %v876_v10 = vadd.s32 256, %v867_v5  ;;  %vm147_vm0 = vcmp.lt.s32.totalorder %v867_v5, 127 }
   0x8   :  { %v74_v12 = vand.u32 15, %v867_v5  ;;  %vm134_vm3 = vcmp.lt.s32.totalorder %v867_v5, 1  ;;  %vm185_vm4 = vcmp.lt.s32.totalorder %v119_v13, 2  ;;  %vm184_vm8 = vcmp.lt.s32.totalorder %v119_v13, 1 }
   0x9   :  { %v81_v11 = vand.u32 15, %v870_v6  ;;  %v95_v14 = vand.u32 15, %v873_v7  ;;  %v88_v15 = vand.u32 15, %v876_v10  ;;  %v26_v58 = vand.u32 255, %v867_v5 }
   0xa   :  { %128 = vrot.lane.b32.xlu1 %v122_v3, %s819_s17  ;;  %126 = vrot.lane.b32.xlu0 %v853_v1, %s819_s17  ;;  %vm890_vm2 = vcmp.eq.s32.totalorder %v74_v12, 15  ;;  %vm918_vm10 = vcmp.eq.s32.totalorder %v74_v12, 0  ;;  %vm210_vm14 = vcmp.lt.s32.totalorder %v867_v5, 16  ;;  %v40_v59 = vand.u32 255, %v876_v10 }
   0xb   :  { %vm883_vm1 = vcmp.eq.s32.totalorder %v81_v11, 15  ;;  %vm898_vm5 = vcmp.eq.s32.totalorder %v95_v14, 15  ;;  %vm153_vm6 = vcmp.eq.s32.totalorder %v81_v11, 0  ;;  %vm906_vm7 = vcmp.eq.s32.totalorder %v88_v15, 15 }
   0xc   :  { %vm926_vm11 = vcmp.eq.s32.totalorder %v88_v15, 0  ;;  %vm930_vm12 = vcmp.eq.s32.totalorder %v95_v14, 0  ;;  %vm198_vm15 = vcmp.lt.s32.totalorder %v26_v58, 16 }
   0xe   :  { %132 = vrot.lane.b32.xlu1 %v859_v2, %s819_s17  ;;  %130 = vrot.lane.b32.xlu0 %v848_v0, %s819_s17 }
  0x74   :  { %v144_v8 = vpop.permute.xlu1 %143  ;;  %v140_v9 = vpop.permute.xlu0 %139 }
  0x78   :  { %v146_v16 = vpop.permute.xlu1 %145  ;;  %v142_v18 = vpop.permute.xlu0 %141 }
  0x79   :  { %v149_v19 = vsel %vm147_vm0, %v142_v18, %v144_v8  ;;  %v150_v22 = vsel %vm147_vm0, %v140_v9, %v142_v18  ;;  %v151_v24 = vsel %vm147_vm0, %v146_v16, %v140_v9  ;;  %v148_v27 = vsel %vm147_vm0, %v144_v8, %v146_v16  ;;  %v779_v16 = vld [vmem:[%s1015_s1 + $0x10] sm:$0xff] }
  0x7a   :  { %v181_v25 = vsel %vm883_vm1, 0.0, %v149_v19  ;;  %v180_v30 = vsel %vm890_vm2, 0.0, %v150_v22  ;;  %v183_v32 = vsel %vm898_vm5, 0.0, %v151_v24  ;;  %v182_v36 = vsel %vm906_vm7, 0.0, %v148_v27 }
  0x7b   :  { %v189_v35 = vsel %vm185_vm4, %v181_v25, %v122_v3  ;;  %v188_v42 = vsel %vm185_vm4, %v180_v30, %v853_v1  ;;  %v191_v46 = vsel %vm185_vm4, %v183_v32, %v859_v2  ;;  %v190_v50 = vsel %vm185_vm4, %v182_v36, %v848_v0  ;;  %v256_v0 = vld [vmem:[%s1015_s1] sm:$0xff]  ;;  %s824_s1 = smov [#allocation2]  }
  0x7c   :  { %v129_v28 = vpop.permute.xlu1 %128  ;;  %v127_v29 = vpop.permute.xlu0 %126  ;;  %vm200_vm0 = vcmp.lt.s32.totalorder %v40_v59, 16  ;;  %v47_v3 = vand.u32 255, %v873_v7  ;;  %vm239_vm1 = vcmp.lt.s32.totalorder %v867_v5, 112  ;;  %v33_v7 = vand.u32 255, %v870_v6  ;;  %s758_s26 = sshll.u32 %s824_s1, 4  ;;  %s759_s26 = int_to_ptr.vmem [resolvable:$true] %s758_s26 }
  0x7d   :  { %v137_v31 = vsel %vm134_vm3, %v127_v29, %v129_v28  ;;  %s796_s27 = scalar_lea.vmem %s759_s26, 512  ;;  %p801_p1 = scmp.lt.s32.totalorder %s759_s26, %s759_s26 }
  0x7e   :  { %v165_v33 = vsel %vm153_vm6, 0.0, %v137_v31  ;;  %vm230_vm2 = vcmp.ge.s32.totalorder %v47_v3, 240  ;;  %p797_p0 = scmp.ne.s32.totalorder %s759_s26, %s796_s27  ;;  %p802_p2 = scmp.lt.s32.totalorder %s796_s27, %s796_s27 }
  0x7f   :  { %v195_v37 = vsel %vm184_vm8, %v165_v33, %v189_v35 }
  0x80   :  { %v133_v40 = vpop.permute.xlu1 %132  ;;  %204 = vrot.lane.b32.xlu1 %v195_v37, %s821_s0  ;;  %767 = vmatprep.subr.msk.mxu0 %vm263_vm9, %v195_v37  ;;  %v131_v41 = vpop.permute.xlu0 %130  ;;  %p803_p3 = por %p802_p2, %p801_p1 }
  0x81   :  { %v138_v43 = vsel %vm134_vm3, %v133_v40, %v127_v29  ;;  %v135_v44 = vsel %vm134_vm3, %v131_v41, %v133_v40  ;;  %v136_v45 = vsel %vm134_vm3, %v129_v28, %v131_v41  ;;  %vm228_vm3 = vcmp.ge.s32.totalorder %v33_v7, 240 }
  0x82   :  { %v164_v47 = vsel %vm918_vm10, 0.0, %v138_v43  ;;  %v166_v48 = vsel %vm926_vm11, 0.0, %v136_v45  ;;  %v167_v49 = vsel %vm930_vm12, 0.0, %v135_v44  ;;  %p804_p4 = pnand %p803_p3, %p797_p0 }
  0x83   :  { %v194_v51 = vsel %vm184_vm8, %v164_v47, %v188_v42  ;;  %v197_v52 = vsel %vm184_vm8, %v167_v49, %v191_v46  ;;  %v196_v53 = vsel %vm184_vm8, %v166_v48, %v190_v50 }
  0x84   :  { %202 = vrot.lane.b32.xlu0 %v194_v51, %s821_s0  ;;  %768 = vmatpush1.msk.msra.mxu0 %vm263_vm9, %v194_v51 }
  0x85   :  { %208 = vrot.lane.b32.xlu1 %v197_v52, %s821_s0  ;;  %770 = vmatprep.subr.msk.mxu1 %vm263_vm9, %v197_v52 }
  0x86   :  { %771 = vmatpush1.msk.msra.mxu1 %vm263_vm9, %v196_v53  ;;  %769 = vmatmul.mubr.msk.f32.vlgmr.msra.gmra.mxu0 %vm259_vm13, %v766_v54 }
  0x87   :  { %772 = vmatmul.mubr.msk.f32.vlgmr.msra.gmra.mxu1 %vm259_vm13, %v766_v54  ;;  %497 = vmatprep.mubr.f32.mxu0 %v820_v20 }
  0x88   :  { %206 = vrot.lane.b32.xlu0 %v196_v53, %s821_s0  ;;  %568 = vmatprep.mubr.f32.mxu1 %v820_v20 }
  0x89   :  { %233 = vrot.lane.b32.xlu1 %v195_v37, %s822_s20 }
  0x8c   :  { %231 = vrot.lane.b32.xlu0 %v194_v51, %s822_s20 }
  0x8d   :  { %237 = vrot.lane.b32.xlu1 %v197_v52, %s822_s20 }
  0x90   :  { %235 = vrot.lane.b32.xlu0 %v196_v53, %s822_s20 }
  0x94   :  { %741 = vperm.xlu0 %793, %v738_v56  }
  0xf2   :  { %v205_v57 = vpop.permute.xlu1 %204 }
  0xf6   :  { %v203_v60 = vpop.permute.xlu0 %202 }
  0xf7   :  { %v209_v61 = vpop.permute.xlu1 %208  ;;  %v213_v62 = vsel %vm210_vm14, %v203_v60, %v205_v57 }
  0xf8   :  { %v214_v63 = vsel %vm210_vm14, %v209_v61, %v203_v60  ;;  %773 = vmatprep.subr.msk.mxu0 %vm263_vm9, %v213_v62 }
  0xf9   :  { %v223_v1 = vsel %vm198_vm15, 0.0, %v214_v63 }
  0xfa   :  { %774 = vmatpush1.msk.msra.mxu0 %vm263_vm9, %v223_v1  ;;  %v207_v2 = vpop.permute.xlu0 %206 }
  0xfb   :  { %v234_v4 = vpop.permute.xlu1 %233  ;;  %v211_v8 = vsel %vm210_vm14, %v207_v2, %v209_v61  ;;  %v212_v9 = vsel %vm210_vm14, %v205_v57, %v207_v2  ;;  %775 = vmatmul.mubr.msk.f32.vlgmr.msra.gmra.mxu0 %vm259_vm13, %v256_v0 }
  0xfc   :  { %v225_v10 = vsel %vm200_vm0, 0.0, %v212_v9  ;;  %776 = vmatprep.subr.msk.mxu1 %vm263_vm9, %v211_v8  ;;  %656 = vmatprep.mubr.f32.mxu0 %v820_v20 }
  0xfd   :  { %777 = vmatpush1.msk.msra.mxu1 %vm263_vm9, %v225_v10 }
  0xfe   :  { %v232_v11 = vpop.permute.xlu0 %231  ;;  %778 = vmatmul.mubr.msk.f32.vlgmr.msra.gmra.mxu1 %vm259_vm13, %v256_v0 }
  0xff   :  { %v238_v12 = vpop.permute.xlu1 %237  ;;  %727 = vmatprep.mubr.f32.mxu1 %v820_v20  ;;  %v242_v19 = vsel %vm239_vm1, %v232_v11, %v234_v4 }
 0x100   :  { %v243_v13 = vsel %vm239_vm1, %v238_v12, %v232_v11 }
 0x101   :  { %v255_v14 = vsel %vm230_vm2, 0.0, %v243_v13 }
 0x102   :  { %783 = vmatprep.subr.msk.mxu1 %vm263_vm9, %v255_v14  ;;  %v236_v15 = vpop.permute.xlu0 %235 }
 0x103   :  { %v240_v6 = vsel %vm239_vm1, %v236_v15, %v238_v12  ;;  %v241_v17 = vsel %vm239_vm1, %v234_v4, %v236_v15 }
 0x104   :  { %v253_v18 = vsel %vm228_vm3, 0.0, %v241_v17  ;;  %784 = vmatpush1.msk.msra.mxu1 %vm263_vm9, %v240_v6 }
 0x105   :  { %780 = vmatprep.subr.msk.mxu0 %vm263_vm9, %v253_v18  ;;  %785 = vmatmul.mubr.msk.f32.vlgmr.msra.gmra.mxu1 %vm259_vm13, %v779_v16 }
 0x106   :  { %781 = vmatpush1.msk.msra.mxu0 %vm263_vm9, %v242_v19 }
 0x107   :  { %782 = vmatmul.mubr.msk.f32.vlgmr.msra.gmra.mxu0 %vm259_vm13, %v779_v16 }
 0x10f   :  { %v742_v28 = vpop.permute.xlu0 %741 }
 0x146   :  { %v342_v21 = vpop.f32.mrf.mxu0 }
 0x147   :  { %v413_v20 = vpop.f32.mrf.mxu1 }
 0x148   :  { %v344_v23 = vpop.f32.mrf.mxu0 }
 0x149   :  { %v415_v22 = vpop.f32.mrf.mxu1 }
 0x1bb   :  { %v499_v25 = vpop.f32.mrf.mxu0 }
 0x1bc   :  { %v500_v30 = vadd.f32 %v499_v25, %v342_v21 }
 0x1bd   :  { %v501_v29 = vpop.f32.mrf.mxu0 }
 0x1be   :  { %v570_v24 = vpop.f32.mrf.mxu1  ;;  %v502_v35 = vadd.f32 %v501_v29, %v344_v23 }
 0x1bf   :  { %v571_v27 = vadd.f32 %v570_v24, %v413_v20 }
 0x1c0   :  { %v572_v26 = vpop.f32.mrf.mxu1 }
 0x1c1   :  { %v573_v31 = vadd.f32 %v572_v26, %v415_v22 }
 0x1c5   :  { %v729_v5 = vpop.f32.mrf.mxu1 }
 0x1c6   :  { %v736_v32 = vadd.f32 %v729_v5, %v571_v27 }
 0x1c7   :  { %v658_v33 = vpop.f32.mrf.mxu0  ;;  %v731_v34 = vpop.f32.mrf.mxu1 }
 0x1c8   :  { %v734_v36 = vadd.f32 %v658_v33, %v500_v30  ;;  %v737_v37 = vadd.f32 %v731_v34, %v573_v31  ;;  %v746_v38 = vadd.f32 %v742_v28, %v736_v32 }
 0x1c9   :  { %v660_v39 = vpop.f32.mrf.mxu0 }
 0x1ca   :  { %v744_v40 = vadd.f32 %v742_v28, %v734_v36  ;;  %v747_v41 = vadd.f32 %v742_v28, %v737_v37  ;;  %750 = vst [vmem:[#allocation2 + $0x10] sm:$0xff] %v746_v38  ;;  %v735_v42 = vadd.f32 %v660_v39, %v502_v35 }
 0x1cc   :  { %748 = vst [vmem:[#allocation2] sm:$0xff] %v744_v40  ;;  %751 = vst [vmem:[#allocation2 + $0x18] sm:$0xff] %v747_v41  ;;  %v745_v43 = vadd.f32 %v742_v28, %v735_v42 }
 0x1ce   :  { %749 = vst [vmem:[#allocation2 + $0x8] sm:$0xff] %v745_v43 }
 0x1cf   :  { %807 = shalt.err (!%p804_p4)
}
 0x1d0   :  { %761 = dma.vmem_to_hbm [thread:$0]  %s759_s26, 512, %s1017_s3, [#allocation3]  }
 0x1d1   :  { %816 = dma.done.wait [#allocation3], 512  }
 0x1d2   :  { %817 = vsyncadd [#allocation3], 4294966784 }
 0x1d3   :  { %765 = vsyncpa [#allocation3], 1 }

</bundles_post_ra>
